<compile_context>
chip_gen: v6e
topology: v6e:2x2x1
jax: 0.10.0
libtpu: 0.0.40
codegen_flags: <defaults>
</compile_context>

<pallas_src>
import jax
import jax.numpy as jnp
from jax.experimental import pallas as pl
from jax.experimental.pallas import tpu as pltpu


def _round_up(x, m):
    return ((x + m - 1) // m) * m


def _vmem_capacity_bytes():
    # Generation-aware VMEM capacity (64 MiB/TC on v7x, 128 MiB on v5e/v6e).
    try:
        return int(pltpu.get_tpu_info().vmem_capacity_bytes)
    except Exception:
        return 64 << 20  # conservative (v7x-safe) fallback


def _word_classifier_kernel(x_ref, w_ref, b_ref, o_ref):
    # x_ref: [TM, H] f32   activations tile
    # w_ref: [H, TV] bf16  weight tile (pre-transposed, MXU-native layout)
    # b_ref: [1, TV] f32   bias tile
    # o_ref: [TM, TV]
    # The 1.00001 scale is applied in f32 (it is below bf16 resolution), then
    # the MXU consumes bf16 operands with an f32 accumulator.
    x = (x_ref[...] * jnp.float32(1.00001)).astype(jnp.bfloat16)
    acc = jnp.dot(x, w_ref[...], preferred_element_type=jnp.float32)
    o_ref[...] = (acc + b_ref[...]).astype(o_ref.dtype)


def prepare_word_classifier(fc_weight, fc_bias, *, tv=2048):
    """One-time (model-load) parameter prep — keep this off the per-call path.

    fc_weight: [V, H] (PyTorch nn.Linear layout), fc_bias: [V].
    Returns (w_hv, bias_2d, vocab_size, tile_v):
      w_hv   : [H, Vp] bf16  (transposed + padded to a multiple of tile_v)
      bias_2d: [1, Vp] f32
    For very large vocabs, pick tv so that Vp // tv is even (v7x megacore).
    """
    V, H = fc_weight.shape
    TV = min(int(tv), _round_up(V, 128))
    Vp = _round_up(V, TV)
    w = fc_weight.astype(jnp.bfloat16).T  # [H, V] — MXU-native (k, n) layout
    b = fc_bias.astype(jnp.float32)
    if Vp != V:
        w = jnp.pad(w, ((0, 0), (0, Vp - V)))
        b = jnp.pad(b, ((0, Vp - V),))
    return w, b.reshape(1, Vp), V, TV


def word_classifier_forward(lstm_output, w_hv, bias_2d, vocab_size, tile_v, *,
                            tm=1024, out_dtype=jnp.float32):
    """lstm_output: [B, S, H] f32; (w_hv, bias_2d, vocab_size, tile_v) from
    prepare_word_classifier. Returns logits [B, S, V] in out_dtype."""
    B, S, H = lstm_output.shape
    Hw, Vp = w_hv.shape
    assert Hw == H and Vp % tile_v == 0
    M = B * S
    out_bytes = jnp.dtype(out_dtype).itemsize

    # ---- tile sizing against a generation-aware VMEM budget ----------------
    TM = min(int(tm), _round_up(M, 8))
    TV = int(tile_v)

    def vmem_need(tm_, tv_):
        # double-buffered x(f32) + W(bf16) + bias(f32) + out tiles
        return 2 * (tm_ * H * 4 + H * tv_ * 2 + tv_ * 4 + tm_ * tv_ * out_bytes)

    cap = _vmem_capacity_bytes()
    budget = int(cap * 0.6)  # leave headroom for compiler internal scratch
    while vmem_need(TM, TV) > budget:
        if TM > 256:
            TM = max(256, _round_up(TM // 2, 8))
        elif TV > 512 and TV % 256 == 0 and Vp % (TV // 2) == 0:
            TV //= 2
        else:
            break

    Mp = _round_up(M, TM)
    m_blocks = Mp // TM
    v_blocks = Vp // TV

    x2d = lstm_output.reshape(M, H).astype(jnp.float32)
    if Mp != M:
        x2d = jnp.pad(x2d, ((0, Mp - M), (0, 0)))

    # ---- grid order: put the operand that would be re-streamed more on the
    # slow axis (the slow-axis operand is fetched from HBM exactly once). ----
    rows_outer_extra = (m_blocks - 1) * Vp * H * 2   # extra W bytes if rows slow
    vocab_outer_extra = (v_blocks - 1) * Mp * H * 4  # extra x bytes if vocab slow
    if rows_outer_extra <= vocab_outer_extra:
        grid = (m_blocks, v_blocks)                  # rows slow, vocab fast
        x_map = lambda i, j: (i, 0)
        w_map = lambda i, j: (0, j)
        b_map = lambda i, j: (0, j)
        o_map = lambda i, j: (i, j)
    else:
        grid = (v_blocks, m_blocks)                  # vocab slow, rows fast
        x_map = lambda j, i: (i, 0)
        w_map = lambda j, i: (0, j)
        b_map = lambda j, i: (0, j)
        o_map = lambda j, i: (i, j)

    vmem_limit = int(min(max(vmem_need(TM, TV) + (4 << 20), 32 << 20),
                         int(cap * 0.85)))

    out2d = pl.pallas_call(
        _word_classifier_kernel,
        out_shape=jax.ShapeDtypeStruct((Mp, Vp), out_dtype),
        grid_spec=pltpu.PrefetchScalarGridSpec(
            num_scalar_prefetch=0,
            grid=grid,
            in_specs=[
                pl.BlockSpec((TM, H), x_map),   # activations (f32)
                pl.BlockSpec((H, TV), w_map),   # weight [H, V] (bf16)
                pl.BlockSpec((1, TV), b_map),   # bias (f32)
            ],
            out_specs=pl.BlockSpec((TM, TV), o_map),  # lane-dense stores
        ),
        compiler_params=pltpu.CompilerParams(
            # Both axes independent -> v7x megacore can split either axis.
            dimension_semantics=("parallel", "parallel"),
            vmem_limit_bytes=vmem_limit,
        ),
    )(x2d, w_hv, bias_2d)

    return out2d[:M, :vocab_size].reshape(B, S, vocab_size)


if __name__ == "__main__":
    # Small shapes implied by the module: LSTM output [batch, seq, n_hidden],
    # fc: Linear(n_hidden -> vocab_size).
    batch, seq, n_hidden, vocab_size = 2, 8, 32, 64
    drop_prob = 0.3  # unused at inference (dropout == identity)

    key = jax.random.PRNGKey(0)
    k_x, k_w, k_b = jax.random.split(key, 3)

    lstm_output = jax.random.normal(k_x, (batch, seq, n_hidden), dtype=jnp.float32)
    # Deterministic params (nn.Linear shapes: weight [V, H], bias [V]).
    fc_weight = jax.random.normal(k_w, (vocab_size, n_hidden), dtype=jnp.float32) * 0.05
    fc_bias = jax.random.normal(k_b, (vocab_size,), dtype=jnp.float32) * 0.05

    # One-time model-load prep (bf16 cast + [H,V] transpose + pad).
    w_hv, bias_2d, V, tile_v = prepare_word_classifier(fc_weight, fc_bias)

    out = word_classifier_forward(lstm_output, w_hv, bias_2d, V, tile_v)
    out = jax.block_until_ready(out)

    # Sanity check against the f32 pure-JAX reference (bf16-operand tolerance).
    ref = (lstm_output * 1.00001) @ fc_weight.T + fc_bias
    assert out.shape == (batch, seq, vocab_size)
    assert jnp.allclose(out, ref, atol=5e-2, rtol=5e-2), \
        float(jnp.max(jnp.abs(out - ref)))

    print("KERNEL_OK")
</pallas_src>

<mosaic_0001>
module attributes {stable_mosaic.version = 11 : i64} {
  func.func @_word_classifier_kernel(%arg0: i32, %arg1: i32, %arg2: memref<16x32xf32, #tpu.memory_space<vmem>>, %arg3: memref<32x128xbf16, #tpu.memory_space<vmem>>, %arg4: memref<1x128xf32, #tpu.memory_space<vmem>>, %arg5: memref<16x128xf32, #tpu.memory_space<vmem>>) attributes {dimension_semantics = [#tpu.dimension_semantics<parallel>, #tpu.dimension_semantics<parallel>], iteration_bounds = array<i64: 1, 1>, scalar_prefetch = 0 : i64, scratch_operands = 0 : i64, tpu.core_type = #tpu.core_type<tc>, window_params = [{transform_indices = @transform_0, window_bounds = array<i64: 16, 32>}, {transform_indices = @transform_1, window_bounds = array<i64: 32, 128>}, {transform_indices = @transform_2, window_bounds = array<i64: 1, 128>}, {transform_indices = @transform_3, window_bounds = array<i64: 16, 128>}]} {
    %c0 = arith.constant 0 : index
    %c0_0 = arith.constant 0 : index
    %0 = vector.load %arg2[%c0, %c0_0] : memref<16x32xf32, #tpu.memory_space<vmem>>, vector<16x32xf32>
    %cst = arith.constant 1.000010e+00 : f32
    %1 = vector.broadcast %cst : f32 to vector<16x32xf32>
    %2 = arith.mulf %0, %1 : vector<16x32xf32>
    %3 = arith.truncf %2 : vector<16x32xf32> to vector<16x32xbf16>
    %c0_1 = arith.constant 0 : index
    %c0_2 = arith.constant 0 : index
    %4 = vector.load %arg3[%c0_1, %c0_2] : memref<32x128xbf16, #tpu.memory_space<vmem>>, vector<32x128xbf16>
    %cst_3 = arith.constant dense<0.000000e+00> : vector<16x128xf32>
    %5 = tpu.matmul %3, %4, %cst_3 {dimension_numbers = #tpu.dot_dimension_numbers<[1], [0], [0], [1], [0, 0, 1, 1], [], []>} : vector<16x32xbf16>, vector<32x128xbf16>, vector<16x128xf32> -> vector<16x128xf32>
    %c0_4 = arith.constant 0 : index
    %c0_5 = arith.constant 0 : index
    %6 = vector.load %arg4[%c0_4, %c0_5] : memref<1x128xf32, #tpu.memory_space<vmem>>, vector<1x128xf32>
    %7 = vector.broadcast %6 : vector<1x128xf32> to vector<16x128xf32>
    %8 = arith.addf %5, %7 : vector<16x128xf32>
    %c0_6 = arith.constant 0 : index
    %c0_7 = arith.constant 0 : index
    %9 = vector.load %arg5[%c0_6, %c0_7] : memref<16x128xf32, #tpu.memory_space<vmem>>, vector<16x128xf32>
    tpu.vector_store %arg5[%c0_6, %c0_7], %8 {strides = array<i32>} : memref<16x128xf32, #tpu.memory_space<vmem>>, vector<16x128xf32>,
    return
  }
  func.func @transform_0(%arg0: i32, %arg1: i32) -> (i32, i32) {
    %c0_i32 = arith.constant 0 : i32
    %c0_i32_0 = arith.constant 0 : i32
    return %arg0, %c0_i32 : i32, i32
  }
  func.func @transform_1(%arg0: i32, %arg1: i32) -> (i32, i32) {
    %c0_i32 = arith.constant 0 : i32
    %c0_i32_0 = arith.constant 0 : i32
    return %c0_i32, %arg1 : i32, i32
  }
  func.func @transform_2(%arg0: i32, %arg1: i32) -> (i32, i32) {
    %c0_i32 = arith.constant 0 : i32
    %c0_i32_0 = arith.constant 0 : i32
    return %c0_i32, %arg1 : i32, i32
  }
  func.func @transform_3(%arg0: i32, %arg1: i32) -> (i32, i32) {
    %c0_i32 = arith.constant 0 : i32
    return %arg0, %arg1 : i32, i32
  }
}

</mosaic_0001>

<bundles_post_ra>
// kernel: tpu_custom_call.1
= control target key start
LH: loop header
LB: loop body
LE: loop exit
PB: predicated region body
PF: predicated region fallthrough
CT: control target
= control target key end

     0   :  { %8 = vsyncpa [#allocation3], 0  ;;  %s276_s0 = inlined_call_operand.hbm [shape: f32[16,32], index: 0, kind: input, shape index: {}]   ;;  %s277_s1 = inlined_call_operand.hbm [shape: bf16[32,128], index: 1, kind: input, shape index: {}]   ;;  %s278_s2 = inlined_call_operand.vmem [shape: f32[1,128], index: 2, kind: input, shape index: {}]   ;;  %s279_s3 = inlined_call_operand.hbm [shape: f32[16,128], index: 3, kind: output, shape index: {}]  }
   0x1   :  { %9 = vsyncpa [#allocation6], 0 }
   0x2   :  { %10 = vsyncpa [#allocation4], 0  ;;  %s229_s12 = smov [#allocation2]  }
   0x3   :  { %s16_s13 = sshll.u32 %s229_s12, 4  ;;  %s17_s13 = int_to_ptr.vmem [resolvable:$true] %s16_s13 }
   0x4   :  { %s171_s14 = scalar_lea.vmem %s17_s13, 256  ;;  %p176_p1 = scmp.lt.s32.totalorder %s17_s13, %s17_s13 }
   0x5   :  { %p172_p0 = scmp.ne.s32.totalorder %s17_s13, %s171_s14  ;;  %p177_p2 = scmp.lt.s32.totalorder %s171_s14, %s171_s14 }
   0x7   :  { %p178_p3 = por %p177_p2, %p176_p1 }
   0x9   :  { %p179_p4 = pnand %p178_p3, %p172_p0 }
   0xb   :  { %182 = shalt.err (!%p179_p4)
}
   0xc   :  { %s230_s15 = smov 128   ;;  %s231_s16 = smov 8  }
   0xd   :  { %22 = dma.hbm_to_vmem [thread:$0]  %s276_s0, 256, %s17_s13, [#allocation3], %s230_s15, %s230_s15, %s231_s16  }
   0xe   :  { %s232_s19 = smov [#allocation5]  }
   0xf   :  { %s28_s20 = sshll.u32 %s232_s19, 4  ;;  %s29_s20 = int_to_ptr.vmem [resolvable:$true] %s28_s20 }
  0x10   :  { %s191_s21 = scalar_lea.vmem %s29_s20, 256  ;;  %p196_p6 = scmp.lt.s32.totalorder %s29_s20, %s29_s20 }
  0x11   :  { %p192_p5 = scmp.ne.s32.totalorder %s29_s20, %s191_s21  ;;  %p197_p7 = scmp.lt.s32.totalorder %s191_s21, %s191_s21 }
  0x13   :  { %p198_p8 = por %p197_p7, %p196_p6 }
  0x15   :  { %p199_p9 = pnand %p198_p8, %p192_p5 }
  0x17   :  { %202 = shalt.err (!%p199_p9)
}
  0x18   :  { %s233_s22 = smov 64   ;;  %s234_s23 = smov 4  }
  0x19   :  { %34 = dma.hbm_to_vmem [thread:$0]  %s277_s1, 256, %s29_s20, [#allocation6], %s233_s22, %s233_s22, %s234_s23  }
  0x1a   :  { %223 = dma.done.wait [#allocation3], 256  }
  0x1b   :  { %224 = vsyncadd [#allocation3], 4294967040 }
  0x1c   :  { %225 = dma.done.wait [#allocation6], 256  }
  0x1d   :  { %226 = vsyncadd [#allocation6], 4294967040  ;;  %v235_v0 = vmov 0.0   ;;  %vm236_vm0 = vmmov 0   ;;  %v161_v1 = vld [vmem:[#allocation5 + $0x8] sm:$0xff]   ;;  %v162_v2 = vld [vmem:[#allocation5] sm:$0xff]  }
  0x1e   :  { %144 = vmatprep.subr.bf16.mxu0 %v235_v0  ;;  %148 = vmatprep.mubr.msk.bf16.mxu0 %vm236_vm0, %v235_v0  ;;  %v44_v3 = vld [vmem:[#allocation2] sm:$0xff]  ;;  %v45_v4 = vld [vmem:[#allocation2 + $0x8] sm:$0xff]  ;;  %vm72_vm1 = vcmask 261120   ;;  %s237_s26 = smov [#allocation7]  }
  0x1f   :  { %145 = vmatpush3.bf16.msra.mxu0 %v161_v1  ;;  %v46_v5 = vmul.f32 1.00001, %v44_v3  ;;  %v47_v6 = vmul.f32 1.00001, %v45_v4  ;;  %v137_v8 = vld [vmem:[%s278_s2] ss:$0 sm:$0xff] }
  0x20   :  { %146 = vmatprep.subr.bf16.mxu0 %v235_v0  ;;  %s124_s27 = sshll.u32 %s237_s26, 4  ;;  %s125_s27 = int_to_ptr.vmem [resolvable:$true] %s124_s27 }
  0x21   :  { %v48_v7 = vpack.c.bf16 %v47_v6, %v46_v5  ;;  %s203_s28 = scalar_lea.vmem %s125_s27, 256  ;;  %p208_p11 = scmp.lt.s32.totalorder %s125_s27, %s125_s27 }
  0x22   :  { %p204_p10 = scmp.ne.s32.totalorder %s125_s27, %s203_s28  ;;  %p209_p12 = scmp.lt.s32.totalorder %s203_s28, %s203_s28 }
  0x23   :  { %147 = vmatpush3.bf16.msra.mxu0 %v162_v2 }
  0x24   :  { %p210_p13 = por %p209_p12, %p208_p11 }
  0x26   :  { %149 = vmatmul.mubr.msk.bf16.vlgmr.msra.gmra.mxu0 %vm72_vm1, %v48_v7  ;;  %p211_p0 = pnand %p210_p13, %p204_p10 }
  0xe6   :  { %v110_v9 = vpop.f32.mrf.mxu0 }
  0xe7   :  { %v111_v10 = vadd.f32 %v137_v8, %v110_v9 }
  0xe8   :  { %v150_v11 = vpop.f32.mrf.mxu0 }
  0xe9   :  { %117 = vst [vmem:[#allocation7] sm:$0xff] %v111_v10 }
  0xea   :  { %v113_v12 = vpop.f32.mrf.mxu0 }
  0xeb   :  { %v114_v13 = vadd.f32 %v137_v8, %v113_v12 }
  0xec   :  { %v151_v14 = vpop.f32.mrf.mxu0 }
  0xed   :  { %118 = vst [vmem:[#allocation7 + $0x8] sm:$0xff] %v114_v13 }
  0xee   :  { %214 = shalt.err (!%p211_p0)
}
  0xef   :  { %130 = dma.vmem_to_hbm [thread:$0]  %s125_s27, 256, %s279_s3, [#allocation4], %s230_s15, %s230_s15, %s231_s16  }
  0xf0   :  { %227 = dma.done.wait [#allocation4], 256  }
  0xf1   :  { %228 = vsyncadd [#allocation4], 4294967040 }
  0xf2   :  { %134 = vsyncpa [#allocation3], 1 }
  0xf3   :  { %135 = vsyncpa [#allocation6], 1 }
  0xf4   :  { %136 = vsyncpa [#allocation4], 1 }

</bundles_post_ra>
